<compile_context>
chip_gen: v5e
topology: v5e:2x2
jax: 0.10.0
libtpu: 0.0.40
codegen_flags: <defaults>
</compile_context>

<pallas_src>
import jax
import jax.numpy as jnp
from jax import lax
from jax.experimental import pallas as pl
from jax.experimental.pallas import tpu as pltpu
import numpy as np


def _round_up(x, m):
    return ((x + m - 1) // m) * m


def _block_spec(block_shape, index_map, n_buffers=None):
    """BlockSpec helper; falls back cleanly if pipeline_mode isn't available."""
    if n_buffers is not None:
        try:
            return pl.BlockSpec(block_shape, index_map,
                                pipeline_mode=pl.Buffered(n_buffers))
        except (TypeError, AttributeError):
            pass
    return pl.BlockSpec(block_shape, index_map)


def _embed_onehot_kernel(ids_ref, table_ref, out_ref):
    """One-hot x table MXU matmul gather.

    ids_ref   : VMEM int32 (tb, 1)         -- task ids for this batch tile
    table_ref : VMEM f32   (NT_pad, D_pad) -- zero-padded embedding table
    out_ref   : VMEM f32   (tb, D_pad)     -- gathered embeddings
    """
    tb = out_ref.shape[0]
    nt = table_ref.shape[0]
    cols = lax.broadcasted_iota(jnp.int32, (tb, nt), 1)
    onehot = (cols == ids_ref[...]).astype(table_ref.dtype)       # (tb, NT_pad)
    out_ref[...] = jnp.dot(
        onehot, table_ref[...], preferred_element_type=jnp.float32
    ).astype(out_ref.dtype)


def task_embedding_encoder(task_id, table):
    """Pallas equivalent of TaskEmbeddingEncoder.forward (nn.Embedding gather)."""
    orig_shape = jnp.shape(task_id)
    ids = jnp.asarray(task_id).reshape(-1).astype(jnp.int32)
    B = ids.shape[0]
    n_tasks, embed_dim = table.shape

    # Clamp ids so a bad id can never read garbage / adjacent VMEM.
    ids = jnp.clip(ids, 0, n_tasks - 1)

    # MXU / lane-aligned padding: contraction dim -> 256k, output lanes -> 128k.
    nt_pad = _round_up(n_tasks, 256)
    d_pad = _round_up(embed_dim, 128)
    table_p = jnp.zeros((nt_pad, d_pad), table.dtype)
    table_p = table_p.at[:n_tasks, :embed_dim].set(table)

    # TODO(synk): for embedding tables too large for VMEM (esp. v7x's 64 MiB),
    # switch to a scalar-prefetch pl.Element row gather against an HBM-resident
    # table instead of loading the whole padded table.

    # Batch tiling: multiple of 8 sublanes; 128 rows per grid step when large.
    tb = 128 if B >= 128 else _round_up(max(B, 1), 8)
    b_pad = _round_up(max(B, 1), tb)
    ids_p = jnp.zeros((b_pad, 1), jnp.int32).at[:B, 0].set(ids)

    grid = (b_pad // tb,)

    out = pl.pallas_call(
        _embed_onehot_kernel,
        out_shape=jax.ShapeDtypeStruct((b_pad, d_pad), table.dtype),
        grid_spec=pltpu.PrefetchScalarGridSpec(
            num_scalar_prefetch=0,
            grid=grid,
            in_specs=[
                pl.BlockSpec((tb, 1), lambda i: (i, 0)),
                # Constant block index across the grid -> single buffer.
                _block_spec((nt_pad, d_pad), lambda i: (0, 0), n_buffers=1),
            ],
            out_specs=pl.BlockSpec((tb, d_pad), lambda i: (i, 0)),
        ),
        compiler_params=pltpu.CompilerParams(
            dimension_semantics=("parallel",)),
    )(ids_p, table_p)

    out = out[:B, :embed_dim]
    return out.reshape(orig_shape + (embed_dim,))


if __name__ == "__main__":
    n_tasks = 10
    embed_dim = 32
    batch = 8

    key = jax.random.PRNGKey(0)
    k_tbl, k_ids = jax.random.split(key)

    # Deterministic "parameters": nn.Embedding default init is N(0, 1).
    table = jax.random.normal(k_tbl, (n_tasks, embed_dim), dtype=jnp.float32)
    task_id = jax.random.randint(k_ids, (batch,), 0, n_tasks, dtype=jnp.int32)

    out = task_embedding_encoder(task_id, table)
    out = jax.block_until_ready(out)

    # Reference check (pure JAX gather). Tolerance covers possible reduced-
    # precision MXU passes for the f32 one-hot matmul; a wrong-row gather would
    # still be caught since distinct N(0,1) rows differ by O(1) >> 2e-2.
    ref = jnp.take(table, task_id, axis=0)
    np.testing.assert_allclose(np.asarray(out), np.asarray(ref),
                               rtol=0.0, atol=2e-2)

    # Structural check: every output row is the *requested* table row, not a
    # neighbor (nearest-row identity must match task_id exactly).
    d2 = jnp.sum((out[:, None, :] - table[None, :, :]) ** 2, axis=-1)
    np.testing.assert_array_equal(np.asarray(jnp.argmin(d2, axis=-1)),
                                  np.asarray(task_id))

    print("KERNEL_OK")
</pallas_src>

<mosaic_0001>
module attributes {stable_mosaic.version = 11 : i64} {
  func.func @_embed_onehot_kernel(%arg0: i32, %arg1: memref<8x1xi32, #tpu.memory_space<vmem>>, %arg2: memref<256x128xf32, #tpu.memory_space<vmem>>, %arg3: memref<8x128xf32, #tpu.memory_space<vmem>>) attributes {dimension_semantics = [#tpu.dimension_semantics<parallel>], iteration_bounds = array<i64: 1>, scalar_prefetch = 0 : i64, scratch_operands = 0 : i64, tpu.core_type = #tpu.core_type<tc>, window_params = [{transform_indices = @transform_0, window_bounds = array<i64: 8, 1>}, {pipeline_mode = #tpu.pipeline_mode<synchronous>, transform_indices = @transform_1, window_bounds = array<i64: 256, 128>}, {transform_indices = @transform_2, window_bounds = array<i64: 8, 128>}]} {
    %0 = tpu.iota {dimensions = array<i32: 1>} : vector<8x256xi32>
    %c0 = arith.constant 0 : index
    %c0_0 = arith.constant 0 : index
    %1 = vector.load %arg1[%c0, %c0_0] : memref<8x1xi32, #tpu.memory_space<vmem>>, vector<8x1xi32>
    %2 = vector.broadcast %1 : vector<8x1xi32> to vector<8x256xi32>
    %3 = arith.cmpi eq, %0, %2 : vector<8x256xi32>
    %4 = arith.extui %3 : vector<8x256xi1> to vector<8x256xi32>
    %5 = arith.sitofp %4 : vector<8x256xi32> to vector<8x256xf32>
    %c0_1 = arith.constant 0 : index
    %c0_2 = arith.constant 0 : index
    %6 = vector.load %arg2[%c0_1, %c0_2] : memref<256x128xf32, #tpu.memory_space<vmem>>, vector<256x128xf32>
    %cst = arith.constant dense<0.000000e+00> : vector<8x128xf32>
    %7 = tpu.matmul %5, %6, %cst {dimension_numbers = #tpu.dot_dimension_numbers<[1], [0], [0], [1], [0, 0, 1, 1], [], []>} : vector<8x256xf32>, vector<256x128xf32>, vector<8x128xf32> -> vector<8x128xf32>
    %c0_3 = arith.constant 0 : index
    %c0_4 = arith.constant 0 : index
    %8 = vector.load %arg3[%c0_3, %c0_4] : memref<8x128xf32, #tpu.memory_space<vmem>>, vector<8x128xf32>
    tpu.vector_store %arg3[%c0_3, %c0_4], %7 {strides = array<i32>} : memref<8x128xf32, #tpu.memory_space<vmem>>, vector<8x128xf32>,
    return
  }
  func.func @transform_0(%arg0: i32) -> (i32, i32) {
    %c0_i32 = arith.constant 0 : i32
    %c0_i32_0 = arith.constant 0 : i32
    return %arg0, %c0_i32 : i32, i32
  }
  func.func @transform_1(%arg0: i32) -> (i32, i32) {
    %c0_i32 = arith.constant 0 : i32
    %c0_i32_0 = arith.constant 0 : i32
    %c0_i32_1 = arith.constant 0 : i32
    return %c0_i32, %c0_i32_0 : i32, i32
  }
  func.func @transform_2(%arg0: i32) -> (i32, i32) {
    %c0_i32 = arith.constant 0 : i32
    %c0_i32_0 = arith.constant 0 : i32
    return %arg0, %c0_i32 : i32, i32
  }
}

</mosaic_0001>

<bundles_post_ra>
// kernel: tpu_custom_call.1
= control target key start
LH: loop header
LB: loop body
LE: loop exit
PB: predicated region body
PF: predicated region fallthrough
CT: control target
= control target key end

     0   :  { %7 = vsyncpa [#allocation3], 0  ;;  %s224_s0 = inlined_call_operand.vmem [shape: s32[8,1], index: 0, kind: input, shape index: {}]   ;;  %s225_s1 = inlined_call_operand.hbm [shape: f32[256,128], index: 1, kind: input, shape index: {}]   ;;  %s226_s2 = inlined_call_operand.hbm [shape: f32[8,128], index: 2, kind: output, shape index: {}]  }
   0x1   :  { %8 = vsyncpa [#allocation4], 0  ;;  %s15_s11 = sshll.u32 %s225_s1, 4  ;;  %s194_s12 = smov [#allocation2]   ;;  %s16_s11 = int_to_ptr.hbm [resolvable:$true] %s15_s11 }
   0x2   :  { %s17_s13 = sshll.u32 %s194_s12, 4  ;;  %s195_s14 = smov 128   ;;  %s18_s13 = int_to_ptr.vmem [resolvable:$true] %s17_s13 }
   0x3   :  { %s196_s15 = smov 8  }
   0x4   :  { %23 = dma.hbm_to_vmem [thread:$0]  %s16_s11, 4096, %s18_s13, [#allocation3], %s195_s14, %s195_s14, %s196_s15  }
   0x5   :  { %190 = dma.done.wait [#allocation3], 4096  }
   0x6   :  { %191 = vsyncadd [#allocation3], 4294963200  ;;  %v197_v0 = vmov 0   ;;  %v31_v1 = vld [vmem:[%s224_s0] sm:$0xff]  ;;  %v56_v2 = vld [vmem:[#allocation2 + $0x78] sm:$0xff]  ;;  %v28_v34 = vlaneseq  ;;  %v198_v38 = vmov 1.0  }
   0x7   :  { %141 = vset.pattern.permute.xlu0 %v197_v0  ;;  %v72_v3 = vld [vmem:[#allocation2 + $0xf8] sm:$0xff]  ;;  %73 = vmatpush.msra.mxu0 %v56_v2  ;;  %v55_v4 = vld [vmem:[#allocation2 + $0x70] sm:$0xff]  ;;  %v54_v6 = vld [vmem:[#allocation2 + $0x68] sm:$0xff]  ;;  %s199_s0 = smov [#allocation5]   ;;  %s121_s20 = sshll.u32 %s226_s2, 4  ;;  %s122_s20 = int_to_ptr.hbm [resolvable:$true] %s121_s20 }
   0x8   :  { %33 = vperm.xlu0 %141, %v31_v1   ;;  %v71_v5 = vld [vmem:[#allocation2 + $0xf0] sm:$0xff]  ;;  %93 = vmatpush.msra.mxu1 %v72_v3  ;;  %v70_v7 = vld [vmem:[#allocation2 + $0xe8] sm:$0xff]  ;;  %v53_v8 = vld [vmem:[#allocation2 + $0x60] sm:$0xff]  ;;  %v29_v35 = vand.u32 127, %v28_v34  ;;  %s119_s1 = sshll.u32 %s199_s0, 4  ;;  %s120_s1 = int_to_ptr.vmem [resolvable:$true] %s119_s1 }
   0x9   :  { %74 = vmatpush.msra.mxu0 %v55_v4  ;;  %v69_v9 = vld [vmem:[#allocation2 + $0xe0] sm:$0xff]  ;;  %v52_v10 = vld [vmem:[#allocation2 + $0x58] sm:$0xff]  ;;  %v51_v12 = vld [vmem:[#allocation2 + $0x50] sm:$0xff] }
   0xa   :  { %94 = vmatpush.msra.mxu1 %v71_v5  ;;  %v68_v11 = vld [vmem:[#allocation2 + $0xd8] sm:$0xff]  ;;  %v67_v13 = vld [vmem:[#allocation2 + $0xd0] sm:$0xff]  ;;  %v50_v14 = vld [vmem:[#allocation2 + $0x48] sm:$0xff]  ;;  %v30_v36 = vadd.s32 128, %v29_v35 }
   0xb   :  { %75 = vmatpush.msra.mxu0 %v54_v6  ;;  %v66_v15 = vld [vmem:[#allocation2 + $0xc8] sm:$0xff]  ;;  %v49_v16 = vld [vmem:[#allocation2 + $0x40] sm:$0xff]  ;;  %v48_v18 = vld [vmem:[#allocation2 + $0x38] sm:$0xff] }
   0xc   :  { %95 = vmatpush.msra.mxu1 %v70_v7  ;;  %v65_v17 = vld [vmem:[#allocation2 + $0xc0] sm:$0xff]  ;;  %v64_v19 = vld [vmem:[#allocation2 + $0xb8] sm:$0xff]  ;;  %v47_v20 = vld [vmem:[#allocation2 + $0x30] sm:$0xff] }
   0xd   :  { %76 = vmatpush.msra.mxu0 %v53_v8  ;;  %v63_v21 = vld [vmem:[#allocation2 + $0xb0] sm:$0xff]  ;;  %v46_v22 = vld [vmem:[#allocation2 + $0x28] sm:$0xff]  ;;  %v45_v24 = vld [vmem:[#allocation2 + $0x20] sm:$0xff] }
   0xe   :  { %96 = vmatpush.msra.mxu1 %v69_v9  ;;  %v62_v23 = vld [vmem:[#allocation2 + $0xa8] sm:$0xff]  ;;  %v61_v25 = vld [vmem:[#allocation2 + $0xa0] sm:$0xff]  ;;  %v44_v26 = vld [vmem:[#allocation2 + $0x18] sm:$0xff] }
   0xf   :  { %77 = vmatpush.msra.mxu0 %v52_v10  ;;  %v60_v27 = vld [vmem:[#allocation2 + $0x98] sm:$0xff]  ;;  %v43_v28 = vld [vmem:[#allocation2 + $0x10] sm:$0xff]  ;;  %v42_v30 = vld [vmem:[#allocation2 + $0x8] sm:$0xff] }
  0x10   :  { %97 = vmatpush.msra.mxu1 %v68_v11  ;;  %v59_v29 = vld [vmem:[#allocation2 + $0x90] sm:$0xff]  ;;  %v58_v31 = vld [vmem:[#allocation2 + $0x88] sm:$0xff]  ;;  %v41_v32 = vld [vmem:[#allocation2] sm:$0xff] }
  0x11   :  { %78 = vmatpush.msra.mxu0 %v51_v12  ;;  %v57_v33 = vld [vmem:[#allocation2 + $0x80] sm:$0xff] }
  0x12   :  { %98 = vmatpush.msra.mxu1 %v67_v13 }
  0x13   :  { %79 = vmatpush.msra.mxu0 %v50_v14 }
  0x14   :  { %99 = vmatpush.msra.mxu1 %v66_v15 }
  0x15   :  { %80 = vmatpush.msra.mxu0 %v49_v16 }
  0x16   :  { %100 = vmatpush.msra.mxu1 %v65_v17 }
  0x17   :  { %81 = vmatpush.msra.mxu0 %v48_v18 }
  0x18   :  { %101 = vmatpush.msra.mxu1 %v64_v19 }
  0x19   :  { %82 = vmatpush.msra.mxu0 %v47_v20 }
  0x1a   :  { %102 = vmatpush.msra.mxu1 %v63_v21 }
  0x1b   :  { %83 = vmatpush.msra.mxu0 %v46_v22 }
  0x1c   :  { %103 = vmatpush.msra.mxu1 %v62_v23 }
  0x1d   :  { %84 = vmatpush.msra.mxu0 %v45_v24 }
  0x1e   :  { %104 = vmatpush.msra.mxu1 %v61_v25 }
  0x1f   :  { %85 = vmatpush.msra.mxu0 %v44_v26 }
  0x20   :  { %105 = vmatpush.msra.mxu1 %v60_v27 }
  0x21   :  { %86 = vmatpush.msra.mxu0 %v43_v28 }
  0x22   :  { %106 = vmatpush.msra.mxu1 %v59_v29 }
  0x23   :  { %87 = vmatpush.msra.mxu0 %v42_v30 }
  0x24   :  { %107 = vmatpush.msra.mxu1 %v58_v31 }
  0x25   :  { %88 = vmatpush.msra.mxu0 %v41_v32 }
  0x26   :  { %108 = vmatpush.msra.mxu1 %v57_v33 }
  0x7a   :  { %v34_v37 = vpop.permute.xlu0 %33 }
  0x7b   :  { %vm35_vm0 = vcmp.eq.s32.totalorder %v29_v35, %v34_v37  ;;  %vm36_vm1 = vcmp.eq.s32.totalorder %v30_v36, %v34_v37 }
  0x7c   :  { %133 = vmatmul.msk.f32.vlgmr.msra.gmra.mxu0 %vm35_vm0, %v198_v38  ;;  %134 = vmatmul.msk.f32.vlgmr.msra.gmra.mxu1 %vm36_vm1, %v198_v38 }
  0xf9   :  { %v90_v39 = vpop.f32.mrf.mxu0  ;;  %v110_v40 = vpop.f32.mrf.mxu1 }
  0xfa   :  { %v111_v41 = vadd.f32 %v110_v40, %v90_v39 }
  0xfc   :  { %113 = vst [vmem:[#allocation5] sm:$0xff] %v111_v41 }
  0xfd   :  { %124 = dma.vmem_to_hbm [thread:$0]  %s120_s1, 128, %s122_s20, [#allocation4]  }
  0xfe   :  { %192 = dma.done.wait [#allocation4], 128  }
  0xff   :  { %193 = vsyncadd [#allocation4], 4294967168 }
 0x100   :  { %129 = vsyncpa [#allocation3], 1 }
 0x101   :  { %130 = vsyncpa [#allocation4], 1 }

</bundles_post_ra>
